<compile_context>
chip_gen: v5e
topology: v5e:2x2
jax: 0.10.0
libtpu: 0.0.40
codegen_flags: <defaults>
</compile_context>

<pallas_src>
from typing import List, Optional

import numpy as np
import jax
import jax.numpy as jnp
from jax import lax
from jax.experimental import pallas as pl
from jax.experimental.pallas import tpu as pltpu


def _round_up(x: int, m: int) -> int:
    return ((x + m - 1) // m) * m


def _padded_tile_bytes(rows: int, cols: int, itemsize: int) -> int:
    """Rough VMEM footprint of a (rows, cols) buffer after (sublane, lane) tiling."""
    sublane = {4: 8, 2: 16, 1: 32}.get(itemsize, 8)
    return _round_up(max(rows, 1), sublane) * _round_up(max(cols, 1), 128) * itemsize


def _make_layer_kernel(*, cin, cin_al, ksize, stride, dilation, pad,
                       copy_len, left_zero, xpad_len, tile_l, num_lt,
                       apply_relu, compute_dtype):
    """Fused Conv1d + folded-BN (+ReLU) kernel for one (batch, Lout-tile) grid cell."""

    right_zero_start = left_zero + copy_len
    right_zero_len = xpad_len - right_zero_start
    tap_off0 = left_zero - pad                 # static tap-offset shift (>= 0)
    read_len = (tile_l - 1) * stride + 1

    def kernel(x_ref, w_ref, scale_ref, shift_ref, o_ref, xpad_ref, pbuf_ref):
        # x_ref:     (1, cin, l_store)        input row for this batch (resident across L tiles)
        # w_ref:     (cout, ksize*cin_al)     bf16 im2col weights (resident)
        # scale_ref: (cout, 1)                f32 folded BN scale
        # shift_ref: (cout, 1)                f32 folded BN shift (+ conv bias)
        # o_ref:     (1, cout, tile_l)        lane-dense output tile
        # xpad_ref:  (cin, xpad_len)          bf16 zero-padded input-row scratch
        # pbuf_ref:  (ksize*cin_al, tile_l)   bf16 im2col patch scratch

        # Build the padded, bf16-cast input row ONCE per batch row (first L tile only).
        # The L-tile axis is "arbitrary", so all later tiles of this batch run on the same
        # core and see the already-built scratch.
        @pl.when(pl.program_id(1) == 0)
        def _build_row():
            if left_zero > 0:
                xpad_ref[:, :left_zero] = jnp.zeros((cin, left_zero), compute_dtype)
            if right_zero_len > 0:
                xpad_ref[:, right_zero_start:] = jnp.zeros(
                    (cin, right_zero_len), compute_dtype)
            # left_zero is 128-aligned -> full-lane stores for the bulk copy.
            xpad_ref[:, left_zero:left_zero + copy_len] = (
                x_ref[0, :, :copy_len].astype(compute_dtype))
            if cin_al != cin:
                # Zero ONLY the sublane-alignment pad rows of the patch buffer: data rows
                # are overwritten every tile, pad rows are never written afterwards.
                for kk in range(ksize):
                    pbuf_ref[kk * cin_al + cin:(kk + 1) * cin_al, :] = jnp.zeros(
                        (cin_al - cin, tile_l), compute_dtype)

        if num_lt == 1:
            base = 0                                      # static path
        else:
            # Valid: tile_l is asserted to be a multiple of 128 by the wrapper.
            base = pl.multiple_of(pl.program_id(1) * (tile_l * stride), 128)

        # im2col patch matrix: row (kk*cin_al + ci) holds channel ci shifted by tap kk.
        # Taps are sliced straight from xpad_ref (no wide window kept live in vregs).
        for kk in range(ksize):
            start = base + (tap_off0 + kk * dilation)
            if stride == 1:
                tap = xpad_ref[:, pl.ds(start, tile_l)]
            else:
                # TODO(synk): move stride-decimation to the xpad copy stage (stride >= 2 only).
                tap = xpad_ref[:, pl.ds(start, read_len)][:, ::stride]
            pbuf_ref[kk * cin_al:kk * cin_al + cin, :] = tap

        # One MXU matmul: (cout, K*cin_al) x (K*cin_al, tile_l), bf16 in / f32 accumulate.
        acc = jnp.dot(w_ref[...], pbuf_ref[...], preferred_element_type=jnp.float32)
        y = acc * scale_ref[...] + shift_ref[...]          # f32 epilogue (BN + bias folded)
        if apply_relu:
            y = jnp.maximum(y, 0.0)
        o_ref[0] = y.astype(o_ref.dtype)

    return kernel


def _conv_bn_relu_layer(x, layer, l_true, *, tile_l, compute_dtype, out_dtype):
    """Run one fused layer. x: (B, Cin, L_store); only x[..., :l_true] is valid."""
    batch, cin, l_store = x.shape
    assert cin == layer["cin"]
    ksize, stride = layer["k"], layer["stride"]
    dilation, pad = layer["dilation"], layer["pad"]
    cin_al, cout = layer["cin_al"], layer["cout"]

    lout_true = (l_true + 2 * pad - dilation * (ksize - 1) - 1) // stride + 1
    assert lout_true > 0, "layer produces empty output"
    assert tile_l % 128 == 0, "tile_l must be a multiple of 128 (pl.multiple_of hint)"
    tile_eff = min(tile_l, _round_up(lout_true, 128))     # don't over-widen tiny outputs
    num_lt = -(-lout_true // tile_eff)                    # ceil-div
    lout_store = num_lt * tile_eff                        # lane-dense (multiple of 128)
    l_work = (lout_store - 1) * stride + dilation * (ksize - 1) + 1   # padded coords needed
    copy_len = min(l_true, l_work - pad)
    assert copy_len > 0
    left_zero = _round_up(pad, 128) if pad > 0 else 0     # lane-aligned valid-data start
    xpad_len = left_zero - pad + l_work

    kernel = _make_layer_kernel(
        cin=cin, cin_al=cin_al, ksize=ksize, stride=stride, dilation=dilation,
        pad=pad, copy_len=copy_len, left_zero=left_zero, xpad_len=xpad_len,
        tile_l=tile_eff, num_lt=num_lt, apply_relu=layer["relu"],
        compute_dtype=compute_dtype)

    # Explicit VMEM budget (double-buffered pipeline blocks + scratch); must fit v7x's 64 MiB.
    in_item = np.dtype(x.dtype).itemsize
    out_item = np.dtype(out_dtype).itemsize
    cdt_item = np.dtype(compute_dtype).itemsize
    needed = (2 * _padded_tile_bytes(cin, l_store, in_item)
              + 2 * _padded_tile_bytes(cout, ksize * cin_al, cdt_item)
              + 4 * _padded_tile_bytes(cout, 1, 4)
              + 2 * _padded_tile_bytes(cout, tile_eff, out_item)
              + _padded_tile_bytes(cin, xpad_len, cdt_item)
              + _padded_tile_bytes(ksize * cin_al, tile_eff, cdt_item))
    assert needed <= (64 << 20), "resident-row layout exceeds the v7x VMEM budget"
    vmem_limit = min(max(2 * needed, 8 << 20), 64 << 20)

    grid_spec = pltpu.PrefetchScalarGridSpec(
        num_scalar_prefetch=0,
        grid=(batch, num_lt),
        in_specs=[
            # Full per-batch row; index_map constant over the L-tile axis -> stays resident.
            pl.BlockSpec((1, cin, l_store), lambda b, j: (b, 0, 0)),
            pl.BlockSpec((cout, ksize * cin_al), lambda b, j: (0, 0)),
            pl.BlockSpec((cout, 1), lambda b, j: (0, 0)),
            pl.BlockSpec((cout, 1), lambda b, j: (0, 0)),
        ],
        out_specs=pl.BlockSpec((1, cout, tile_eff), lambda b, j: (b, 0, j)),
        scratch_shapes=[
            pltpu.VMEM((cin, xpad_len), compute_dtype),
            pltpu.VMEM((ksize * cin_al, tile_eff), compute_dtype),
        ],
    )

    y = pl.pallas_call(
        kernel,
        out_shape=jax.ShapeDtypeStruct((batch, cout, lout_store), out_dtype),
        grid_spec=grid_spec,
        compiler_params=pltpu.CompilerParams(
            # L-tile axis must be "arbitrary": the per-batch xpad scratch is built at j == 0
            # and reused by later tiles of the same batch on the same core.
            dimension_semantics=("parallel", "arbitrary"),
            vmem_limit_bytes=vmem_limit),
    )(x, layer["w2d"], layer["scale"], layer["shift"])
    return y, lout_true


class CNN1dPallas:
    """Pallas/JAX reimplementation of the PyTorch CNN1d module (eval-mode forward)."""

    def __init__(self,
                 channel_counts: List[int],
                 kernel_sizes: List[int],
                 paddings: Optional[List[int]] = None,
                 strides: Optional[List[int]] = None,
                 dilations: Optional[List[int]] = None,
                 dropouts: Optional[List[float]] = None,
                 groups: Optional[List[int]] = None,
                 *,
                 tile_l: int = 256,
                 compute_dtype=jnp.bfloat16,
                 key=jax.random.PRNGKey(0)):
        layer_count = len(channel_counts) - 1
        assert layer_count == len(kernel_sizes)
        paddings = paddings if paddings is not None else [0] * layer_count
        strides = strides if strides is not None else [1] * layer_count
        dilations = dilations if dilations is not None else [1] * layer_count
        groups = groups if groups is not None else [1] * layer_count
        assert all(g == 1 for g in groups), "groups > 1 not supported"
        if dropouts is not None:
            # Dropout1d is identity in eval mode -> no kernel work needed.
            assert layer_count - 1 == len(dropouts)

        self.tile_l = tile_l
        self.compute_dtype = compute_dtype
        sublane_mult = 8 if np.dtype(compute_dtype).itemsize == 4 else 16
        self.layers = []
        eps = 1e-5

        for li in range(layer_count):
            cin, cout, k = channel_counts[li], channel_counts[li + 1], kernel_sizes[li]
            key, wkey, bkey = jax.random.split(key, 3)
            fan_in = cin * k
            # Deterministic He-style weight init; PyTorch-style uniform bias.
            w = jax.random.normal(wkey, (cout, cin, k), jnp.float32) * jnp.sqrt(2.0 / fan_in)
            bound = 1.0 / jnp.sqrt(float(fan_in))
            b = jax.random.uniform(bkey, (cout,), jnp.float32, -bound, bound)

            if li != layer_count - 1:
                # BatchNorm1d eval-mode defaults: gamma=1, beta=0, mean=0, var=1.
                gamma = jnp.ones((cout,), jnp.float32)
                beta = jnp.zeros((cout,), jnp.float32)
                r_mean = jnp.zeros((cout,), jnp.float32)
                r_var = jnp.ones((cout,), jnp.float32)
                bn_scale = gamma / jnp.sqrt(r_var + eps)
                eff_scale = bn_scale
                eff_shift = (b - r_mean) * bn_scale + beta   # conv bias folded into shift
                relu = True
            else:
                eff_scale = jnp.ones((cout,), jnp.float32)
                eff_shift = b
                relu = False

            # im2col weight: w2d[o, kk*cin_al + ci] = w[o, ci, kk]
            # (Cin padded to the bf16 sublane-group multiple 16).
            cin_al = _round_up(cin, sublane_mult)
            w_t = jnp.transpose(w, (0, 2, 1))                # (cout, K, cin)
            if cin_al != cin:
                w_t = jnp.pad(w_t, ((0, 0), (0, 0), (0, cin_al - cin)))
            w2d = w_t.reshape(cout, k * cin_al).astype(compute_dtype)

            self.layers.append(dict(
                w=w, w2d=w2d,
                scale=eff_scale.reshape(cout, 1), shift=eff_shift.reshape(cout, 1),
                relu=relu, k=k, stride=strides[li], dilation=dilations[li],
                pad=paddings[li], cin=cin, cin_al=cin_al, cout=cout))

    def __call__(self, x):
        # x: (B, C, L) float32
        l_true = x.shape[2]
        n = len(self.layers)
        for i, layer in enumerate(self.layers):
            # bf16 inter-layer activations (mem-bound chain); final layer output stays f32.
            out_dtype = jnp.float32 if i == n - 1 else self.compute_dtype
            x, l_true = _conv_bn_relu_layer(
                x, layer, l_true, tile_l=self.tile_l,
                compute_dtype=self.compute_dtype, out_dtype=out_dtype)
        # Drop the lane padding once at the very end, then Flatten like nn.Flatten.
        return x[:, :, :l_true].reshape(x.shape[0], -1)


def _reference_forward(model: CNN1dPallas, x):
    """Pure-JAX (lax.conv) reference mirroring the kernel's bf16-operand / f32-accum math
    and the bf16 inter-layer activation storage."""
    cdt = model.compute_dtype
    n = len(model.layers)
    for i, layer in enumerate(model.layers):
        xq = x.astype(cdt).astype(jnp.float32)            # same operand quantization as kernel
        wq = layer["w"].astype(cdt).astype(jnp.float32)
        y = lax.conv_general_dilated(
            xq, wq,
            window_strides=(layer["stride"],),
            padding=[(layer["pad"], layer["pad"])],
            rhs_dilation=(layer["dilation"],),
            dimension_numbers=("NCH", "OIH", "NCH"),
            precision=lax.Precision.HIGHEST)
        y = y * layer["scale"][None, :, :] + layer["shift"][None, :, :]
        if layer["relu"]:
            y = jnp.maximum(y, 0.0)
        if i != n - 1:
            y = y.astype(cdt).astype(jnp.float32)         # bf16 inter-layer storage
        x = y
    return x.reshape(x.shape[0], -1)


if __name__ == "__main__":
    key = jax.random.PRNGKey(0)
    xkey, pkey = jax.random.split(key)

    # Small config consistent with the module: 2 conv layers.
    channel_counts = [4, 8, 16]
    kernel_sizes = [3, 3]
    paddings = [1, 0]
    dropouts = [0.1]   # identity in eval mode

    model = CNN1dPallas(channel_counts, kernel_sizes, paddings=paddings,
                        dropouts=dropouts, key=pkey)

    batch, cin, seq = 2, 4, 16
    x = jax.random.normal(xkey, (batch, cin, seq), jnp.float32)

    out = jax.block_until_ready(model(x))
    ref = jax.block_until_ready(_reference_forward(model, x))

    assert out.shape == ref.shape, (out.shape, ref.shape)
    # bf16 MXU operands / bf16 intermediates -> tiny quantization differences vs reference.
    assert jnp.allclose(out, ref, atol=1e-2, rtol=1e-2), float(jnp.max(jnp.abs(out - ref)))

    print("KERNEL_OK")
</pallas_src>

<mosaic_0001>
module attributes {stable_mosaic.version = 11 : i64} {
  func.func @kernel(%arg0: i32, %arg1: i32, %arg2: memref<1x4x16xf32, #tpu.memory_space<vmem>>, %arg3: memref<8x48xbf16, #tpu.memory_space<vmem>>, %arg4: memref<8x1xf32, #tpu.memory_space<vmem>>, %arg5: memref<8x1xf32, #tpu.memory_space<vmem>>, %arg6: memref<1x8x128xbf16, #tpu.memory_space<vmem>>, %arg7: memref<4x257xbf16, #tpu.memory_space<vmem>>, %arg8: memref<48x128xbf16, #tpu.memory_space<vmem>>) attributes {dimension_semantics = [#tpu.dimension_semantics<parallel>, #tpu.dimension_semantics<arbitrary>], iteration_bounds = array<i64: 2, 1>, scalar_prefetch = 0 : i64, scratch_operands = 2 : i64, tpu.core_type = #tpu.core_type<tc>, window_params = [{transform_indices = @transform_0, window_bounds = array<i64: 1, 4, 16>}, {pipeline_mode = #tpu.pipeline_mode<synchronous>, transform_indices = @transform_1, window_bounds = array<i64: 8, 48>}, {pipeline_mode = #tpu.pipeline_mode<synchronous>, transform_indices = @transform_2, window_bounds = array<i64: 8, 1>}, {pipeline_mode = #tpu.pipeline_mode<synchronous>, transform_indices = @transform_3, window_bounds = array<i64: 8, 1>}, {transform_indices = @transform_4, window_bounds = array<i64: 1, 8, 128>}]} {
    %c0_i32 = arith.constant 0 : i32
    %0 = arith.cmpi eq, %arg1, %c0_i32 : i32
    %1 = arith.extui %0 : i1 to i32
    %c0_i32_0 = arith.constant 0 : i32
    %2 = arith.cmpi ne, %1, %c0_i32_0 : i32
    scf.if %2 {
      %cst_19 = arith.constant 0.000000e+00 : bf16
      %24 = vector.broadcast %cst_19 : bf16 to vector<4x128xbf16>
      %c0_20 = arith.constant 0 : index
      %c0_21 = arith.constant 0 : index
      %25 = vector.load %arg7[%c0_20, %c0_21] : memref<4x257xbf16, #tpu.memory_space<vmem>>, vector<4x128xbf16>
      tpu.vector_store %arg7[%c0_20, %c0_21], %24 {strides = array<i32>} : memref<4x257xbf16, #tpu.memory_space<vmem>>, vector<4x128xbf16>,
      %cst_22 = arith.constant 0.000000e+00 : bf16
      %26 = vector.broadcast %cst_22 : bf16 to vector<4x113xbf16>
      %c0_23 = arith.constant 0 : index
      %c144 = arith.constant 144 : index
      %27 = vector.load %arg7[%c0_23, %c144] : memref<4x257xbf16, #tpu.memory_space<vmem>>, vector<4x113xbf16>
      tpu.vector_store %arg7[%c0_23, %c144], %26 {strides = array<i32>} : memref<4x257xbf16, #tpu.memory_space<vmem>>, vector<4x113xbf16>,
      %c0_24 = arith.constant 0 : index
      %c0_25 = arith.constant 0 : index
      %c0_26 = arith.constant 0 : index
      %28 = vector.load %arg2[%c0_24, %c0_25, %c0_26] : memref<1x4x16xf32, #tpu.memory_space<vmem>>, vector<1x4x16xf32>
      %29 = vector.shape_cast %28 : vector<1x4x16xf32> to vector<4x16xf32>
      %30 = arith.truncf %29 : vector<4x16xf32> to vector<4x16xbf16>
      %c0_27 = arith.constant 0 : index
      %c128_28 = arith.constant 128 : index
      %31 = vector.load %arg7[%c0_27, %c128_28] : memref<4x257xbf16, #tpu.memory_space<vmem>>, vector<4x16xbf16>
      tpu.vector_store %arg7[%c0_27, %c128_28], %30 {strides = array<i32>} : memref<4x257xbf16, #tpu.memory_space<vmem>>, vector<4x16xbf16>,
      %cst_29 = arith.constant 0.000000e+00 : bf16
      %32 = vector.broadcast %cst_29 : bf16 to vector<12x128xbf16>
      %c4 = arith.constant 4 : index
      %c0_30 = arith.constant 0 : index
      %33 = vector.load %arg8[%c4, %c0_30] : memref<48x128xbf16, #tpu.memory_space<vmem>>, vector<12x128xbf16>
      tpu.vector_store %arg8[%c4, %c0_30], %32 {strides = array<i32>} : memref<48x128xbf16, #tpu.memory_space<vmem>>, vector<12x128xbf16>,
      %cst_31 = arith.constant 0.000000e+00 : bf16
      %34 = vector.broadcast %cst_31 : bf16 to vector<12x128xbf16>
      %c20 = arith.constant 20 : index
      %c0_32 = arith.constant 0 : index
      %35 = vector.load %arg8[%c20, %c0_32] : memref<48x128xbf16, #tpu.memory_space<vmem>>, vector<12x128xbf16>
      tpu.vector_store %arg8[%c20, %c0_32], %34 {strides = array<i32>} : memref<48x128xbf16, #tpu.memory_space<vmem>>, vector<12x128xbf16>,
      %cst_33 = arith.constant 0.000000e+00 : bf16
      %36 = vector.broadcast %cst_33 : bf16 to vector<12x128xbf16>
      %c36 = arith.constant 36 : index
      %c0_34 = arith.constant 0 : index
      %37 = vector.load %arg8[%c36, %c0_34] : memref<48x128xbf16, #tpu.memory_space<vmem>>, vector<12x128xbf16>
      tpu.vector_store %arg8[%c36, %c0_34], %36 {strides = array<i32>} : memref<48x128xbf16, #tpu.memory_space<vmem>>, vector<12x128xbf16>,
    } else {
    }
    %c0 = arith.constant 0 : index
    %c127 = arith.constant 127 : index
    %3 = vector.load %arg7[%c0, %c127] : memref<4x257xbf16, #tpu.memory_space<vmem>>, vector<4x128xbf16>
    %c0_1 = arith.constant 0 : index
    %c0_2 = arith.constant 0 : index
    %4 = vector.load %arg8[%c0_1, %c0_2] : memref<48x128xbf16, #tpu.memory_space<vmem>>, vector<4x128xbf16>
    tpu.vector_store %arg8[%c0_1, %c0_2], %3 {strides = array<i32>} : memref<48x128xbf16, #tpu.memory_space<vmem>>, vector<4x128xbf16>,
    %c0_3 = arith.constant 0 : index
    %c128 = arith.constant 128 : index
    %5 = vector.load %arg7[%c0_3, %c128] : memref<4x257xbf16, #tpu.memory_space<vmem>>, vector<4x128xbf16>
    %c16 = arith.constant 16 : index
    %c0_4 = arith.constant 0 : index
    %6 = vector.load %arg8[%c16, %c0_4] : memref<48x128xbf16, #tpu.memory_space<vmem>>, vector<4x128xbf16>
    tpu.vector_store %arg8[%c16, %c0_4], %5 {strides = array<i32>} : memref<48x128xbf16, #tpu.memory_space<vmem>>, vector<4x128xbf16>,
    %c0_5 = arith.constant 0 : index
    %c129 = arith.constant 129 : index
    %7 = vector.load %arg7[%c0_5, %c129] : memref<4x257xbf16, #tpu.memory_space<vmem>>, vector<4x128xbf16>
    %c32 = arith.constant 32 : index
    %c0_6 = arith.constant 0 : index
    %8 = vector.load %arg8[%c32, %c0_6] : memref<48x128xbf16, #tpu.memory_space<vmem>>, vector<4x128xbf16>
    tpu.vector_store %arg8[%c32, %c0_6], %7 {strides = array<i32>} : memref<48x128xbf16, #tpu.memory_space<vmem>>, vector<4x128xbf16>,
    %c0_7 = arith.constant 0 : index
    %c0_8 = arith.constant 0 : index
    %9 = vector.load %arg3[%c0_7, %c0_8] : memref<8x48xbf16, #tpu.memory_space<vmem>>, vector<8x48xbf16>
    %c0_9 = arith.constant 0 : index
    %c0_10 = arith.constant 0 : index
    %10 = vector.load %arg8[%c0_9, %c0_10] : memref<48x128xbf16, #tpu.memory_space<vmem>>, vector<48x128xbf16>
    %cst = arith.constant dense<0.000000e+00> : vector<8x128xf32>
    %11 = tpu.matmul %9, %10, %cst {dimension_numbers = #tpu.dot_dimension_numbers<[1], [0], [0], [1], [0, 0, 1, 1], [], []>} : vector<8x48xbf16>, vector<48x128xbf16>, vector<8x128xf32> -> vector<8x128xf32>
    %c0_11 = arith.constant 0 : index
    %c0_12 = arith.constant 0 : index
    %12 = vector.load %arg4[%c0_11, %c0_12] : memref<8x1xf32, #tpu.memory_space<vmem>>, vector<8x1xf32>
    %13 = vector.broadcast %12 : vector<8x1xf32> to vector<8x128xf32>
    %14 = arith.mulf %11, %13 : vector<8x128xf32>
    %c0_13 = arith.constant 0 : index
    %c0_14 = arith.constant 0 : index
    %15 = vector.load %arg5[%c0_13, %c0_14] : memref<8x1xf32, #tpu.memory_space<vmem>>, vector<8x1xf32>
    %16 = vector.broadcast %15 : vector<8x1xf32> to vector<8x128xf32>
    %17 = arith.addf %14, %16 : vector<8x128xf32>
    %cst_15 = arith.constant 0.000000e+00 : f32
    %18 = vector.broadcast %cst_15 : f32 to vector<8x128xf32>
    %19 = arith.maximumf %17, %18 : vector<8x128xf32>
    %20 = arith.truncf %19 : vector<8x128xf32> to vector<8x128xbf16>
    %c0_16 = arith.constant 0 : index
    %c0_17 = arith.constant 0 : index
    %c0_18 = arith.constant 0 : index
    %21 = vector.load %arg6[%c0_16, %c0_17, %c0_18] : memref<1x8x128xbf16, #tpu.memory_space<vmem>>, vector<1x8x128xbf16>
    %22 = vector.shape_cast %21 : vector<1x8x128xbf16> to vector<8x128xbf16>
    %23 = vector.shape_cast %20 : vector<8x128xbf16> to vector<1x8x128xbf16>
    tpu.vector_store %arg6[%c0_16, %c0_17, %c0_18], %23 {strides = array<i32>} : memref<1x8x128xbf16, #tpu.memory_space<vmem>>, vector<1x8x128xbf16>,
    return
  }
  func.func @transform_0(%arg0: i32, %arg1: i32) -> (i32, i32, i32) {
    %c0_i32 = arith.constant 0 : i32
    %c0_i32_0 = arith.constant 0 : i32
    %c0_i32_1 = arith.constant 0 : i32
    return %arg0, %c0_i32, %c0_i32_0 : i32, i32, i32
  }
  func.func @transform_1(%arg0: i32, %arg1: i32) -> (i32, i32) {
    %c0_i32 = arith.constant 0 : i32
    %c0_i32_0 = arith.constant 0 : i32
    %c0_i32_1 = arith.constant 0 : i32
    return %c0_i32, %c0_i32_0 : i32, i32
  }
  func.func @transform_2(%arg0: i32, %arg1: i32) -> (i32, i32) {
    %c0_i32 = arith.constant 0 : i32
    %c0_i32_0 = arith.constant 0 : i32
    %c0_i32_1 = arith.constant 0 : i32
    return %c0_i32, %c0_i32_0 : i32, i32
  }
  func.func @transform_3(%arg0: i32, %arg1: i32) -> (i32, i32) {
    %c0_i32 = arith.constant 0 : i32
    %c0_i32_0 = arith.constant 0 : i32
    %c0_i32_1 = arith.constant 0 : i32
    return %c0_i32, %c0_i32_0 : i32, i32
  }
  func.func @transform_4(%arg0: i32, %arg1: i32) -> (i32, i32, i32) {
    %c0_i32 = arith.constant 0 : i32
    %c0_i32_0 = arith.constant 0 : i32
    return %arg0, %c0_i32, %arg1 : i32, i32, i32
  }
}

</mosaic_0001>

<bundles_post_ra>
// kernel: tpu_custom_call.1
= control target key start
LH: loop header
LB: loop body
LE: loop exit
PB: predicated region body
PF: predicated region fallthrough
CT: control target
= control target key end

     0   :  { %9 = vsyncpa [#allocation5], 0  ;;  %s698_s0 = inlined_call_operand.vmem [shape: f32[2,4,16], index: 0, kind: input, shape index: {}]   ;;  %s699_s1 = inlined_call_operand.vmem [shape: bf16[8,48], index: 1, kind: input, shape index: {}]   ;;  %s700_s2 = inlined_call_operand.vmem [shape: f32[8,1], index: 2, kind: input, shape index: {}]   ;;  %s701_s3 = inlined_call_operand.vmem [shape: f32[8,1], index: 3, kind: input, shape index: {}]   ;;  %s702_s4 = inlined_call_operand.hbm [shape: bf16[2,8,128], index: 4, kind: output, shape index: {}]  }
   0x1   :  { %11 = vsyncpa [#allocation5 + $0x1], 0  ;;  %s592_s15 = smov 0   ;;  %s594_s16 = smov 0  }
   0x2   :  { %s596_s17 = smov 0   ;;  %s598_s18 = smov 0  }
   0x3   :  { %s600_s19 = smov 0   ;;  %s602_s20 = smov 0  }
   0x4 LB: > { %s397_s21 = sadd.s32 4294967295, %s562_s20   ;;  %s398_s22 = sadd.s32 4294967294, %s562_s20   ;;  %s562_s20 = sphi %s602_s20, %s17_s20   ;;  %s558_s19 = sphi %s600_s19, %s709_s19   ;;  %s554_s18 = sphi %s598_s18, %s708_s18   ;;  %s550_s17 = sphi %s596_s17, %s707_s17   ;;  %s546_s16 = sphi %s594_s16, %s706_s16   ;;  %s542_s15 = sphi %s592_s15, %s705_s15  }
   0x5   : > { %s29_s23 = sadd.s32 1, %s558_s19  ;;  %s127_s24 = sadd.s32 1, %s550_s17 }
   0x6   : > { %p31_p0 = scmp.ge.s32.totalorder %s29_s23, 2  ;;  %p137_p1 = scmp.ne.s32.totalorder %s550_s17, %s546_s16 }
   0x7   : > { %p138_p2 = scmp.eq.s32.totalorder %s397_s21, 1  ;;  %p143_p3 = scmp.ne.s32.totalorder %s546_s16, %s542_s15 }
   0x8   : > { %s711_s23 = smov (%p31_p0, %s29_s23), 0  ;;  %p144_p5 = scmp.eq.s32.totalorder %s398_s22, 1 }
   0x9   : > { %p632_p4 = por %p138_p2, %p137_p1  ;;  %s122_s26 = ssub.s32 %s558_s19, %s711_s23 }
   0xa   : > { %p401_p6 = scmp.ge.s32.totalorder %s562_s20, 1  ;;  %p125_p7 = scmp.eq.s32.totalorder %s122_s26, 0 }
   0xb   : > { %p639_p8 = por %p144_p5, %p143_p3  ;;  %p178_p9 = scmp.lt.s32.totalorder %s562_s20, 3 }
   0xc   : > { %s645_s28 = scalar_select %p125_p7, %s550_s17, %s127_s24  }
   0xd   : > { %p179_p10 = pnand %p401_p6, %p178_p9 }
   0xe   : > { %p203_p11 = scmp.lt.s32.totalorder (!%p179_p10), %s554_s18, 1  ;;  %s565_s8 = smov (!%p179_p10), 127  }
   0xf   : > { %182 = sbr.rel (%p179_p10) target bundleno = 327 (0x147), region = 36  ;;  %s566_s9 = smov (!%p179_p10), 1  }
  0x10   : > { %s200_s22 = sand.u32 (!%p179_p10), 1, %s546_s16   ;;  %s418_s26 = sshll.u32 (!%p179_p10), %s554_s18, 2 }
  0x11   : > { %s402_s24 = sshll.u32 (!%p179_p10), %s200_s22, 2  ;;  %s324_s5 = scalar_lea.hbm (!%p179_p10), %s702_s4, %s418_s26 }
  0x12   : > { %s202_s6 = scalar_lea.vmem (!%p179_p10), [#allocation4], %s402_s24  ;;  %s504_s13 = scalar_lea.hbm (!%p179_p10), %s702_s4, 8 }
  0x14   : > { %vm213_vm0 = vcmask 1041536   ;;  %vm214_vm1 = vcmask 3074   ;;  %v564_v0 = vmov 0   ;;  %s204_s29 = scalar_select %p203_p11, %s554_s18, 1  ;;  %vm219_vm3 = vcmask 123904   ;;  %v295_v8 = vld [vmem:[%s700_s2] sm:$0xff] }
  0x15   : > { %212 = vst [vmem:[#allocation2] sm:$0x3] %v564_v0  ;;  %vm215_vm2 = vmor %vm214_vm1, %vm213_vm0  ;;  %482 = vset.pattern.permute.xlu1 %v564_v0  ;;  %483 = vset.pattern.permute.xlu0 %v564_v0  ;;  %v302_v9 = vld [vmem:[%s701_s3] sm:$0xff]  ;;  %vm249_vm4 = vcmask 1039360   ;;  %vm235_vm5 = vcmask 7168   ;;  %vm278_vm6 = vcmask 392192  }
  0x16   : > { %216 = vst.msk [vmem:[#allocation2 + $0x2] sm:$0xf] %vm215_vm2, %v564_v0  ;;  %s403_s30 = sshll.u32 %s204_s29, 2  ;;  %298 = vperm.xlu1 %482, %v295_v8   ;;  %v253_v19 = vld [vmem:[%s699_s1] sm:$0xf] }
  0x17   : > { %221 = vst [vmem:[#allocation3] sm:$0xc] %v564_v0  ;;  %s206_s7 = scalar_lea.vmem %s698_s0, %s403_s30 }
  0x18   : > { %222 = vst [vmem:[#allocation3 + $0x4] sm:$0xf] %v564_v0  ;;  %v217_v1 = vld [vmem:[%s206_s7] sm:$0xf]  ;;  %s326_s7 = sshll.u32 %s202_s6, 4  ;;  %s327_s7 = int_to_ptr.vmem [resolvable:$true] %s326_s7 }
  0x19   : > { %223 = vst [vmem:[#allocation3 + $0x8] sm:$0xc] %v564_v0  ;;  %v218_v2 = vpack.c.bf16 %v217_v1, %v217_v1 }
  0x1a   : > { %224 = vst [vmem:[#allocation3 + $0xc] sm:$0xf] %v564_v0 }
  0x1b   : > { %225 = vst [vmem:[#allocation3 + $0x10] sm:$0xc] %v564_v0 }
  0x1c   : > { %226 = vst [vmem:[#allocation3 + $0x14] sm:$0xf] %v564_v0 }
  0x1d   : > { %220 = vst.msk [vmem:[#allocation2 + $0x2] sm:$0x3] %vm219_vm3, %v218_v2 }
  0x1e   : > { %305 = vperm.xlu1 %482, %v302_v9  }
  0x24   : > { %v227_v3 = vld [vmem:[#allocation2] sm:$0xf] }
  0x25   : > { %229 = vst [vmem:[#allocation1] ss:$2 sm:$0xff] %v227_v3  ;;  %v241_v4 = vld [vmem:[#allocation2 + $0x2] sm:$0xf] }
  0x26   : > { %v239_v7 = vld [vmem:[#allocation2 + $0x2] sm:$0x3] }
  0x27   : > { %240 = vst [vmem:[#allocation3 + $0x8] sm:$0x3] %v239_v7 }
  0x2c   : > { %v230_v5 = vld.sshfl [vmem:[#allocation1] sm:$0xff pattern:$0x75643120] }
  0x2d   : > { %243 = vst [vmem:[#allocation1] ss:$2 sm:$0xff] %v241_v4 }
  0x2e   : > { %v422_v17 = vld [vmem:[#allocation3 + $0x8] sm:$0xff] }
  0x34   : > { %v244_v6 = vld.sshfl [vmem:[#allocation1] sm:$0xff pattern:$0x75643120] }
  0x35   : > { %246 = vrot.lane.b32.xlu0 %v244_v6, %s565_s8  ;;  %s328_s8 = sshll.u32 %s324_s5, 4  ;;  %s329_s8 = int_to_ptr.hbm [resolvable:$true] %s328_s8 }
  0x36   : > { %s498_s18 = sshra.s32 %s329_s8, 4  ;;  %s499_s18 = int_to_ptr.hbm [resolvable:$true] %s498_s18 }
  0x37   : > { %s500_s10 = scalar_lea.hbm %s499_s18, 4  ;;  %p505_p1 = scmp.lt.s32.totalorder %s499_s18, %s702_s4 }
  0x38   : > { %p501_p12 = scmp.ne.s32.totalorder %s499_s18, %s500_s10  ;;  %p506_p2 = scmp.lt.s32.totalorder %s504_s13, %s500_s10 }
  0x3a   : > { %p502_p13 = pnand %p501_p12, %p632_p4  ;;  %p507_p3 = por %p506_p2, %p505_p1 }
  0x3c   : > { %p503_p0 = pneg %p502_p13 }
  0x3d   : > { %232 = vrot.lane.b32.xlu0 %v230_v5, %s566_s9  ;;  %s313_s9 = scalar_lea.sflag [#allocation5], %s200_s22 }
  0x3e   : > { %p508_p5 = pnand %p507_p3, %p503_p0 }
  0x88   : > { %v299_v20 = vpop.permute.xlu1 %298 }
  0x90   : > { %v306_v23 = vpop.permute.xlu1 %305 }
  0xa7   : > { %v247_v10 = vpop.permute.xlu0 %246 }
  0xa8   : > { %v248_v11 = vrot.slane %v247_v10, 4 }
  0xaa   : > { %v250_v12 = vsel %vm249_vm4, %v247_v10, %v248_v11 }
  0xab   : > { %252 = vst [vmem:[#allocation3 + $0x10] sm:$0x3] %v250_v12 }
  0xaf   : > { %v233_v13 = vpop.permute.xlu0 %232 }
  0xb0   : > { %v234_v14 = vrot.slane %v233_v13, 4 }
  0xb2   : > { %v236_v15 = vsel %vm235_vm5, %v233_v13, %v234_v14  ;;  %v423_v16 = vld [vmem:[#allocation3 + $0x10] sm:$0xff] }
  0xb3   : > { %238 = vst [vmem:[#allocation3] sm:$0x3] %v236_v15  ;;  %287 = vmatpush.bf16.msra.mxu0 %v423_v16 }
  0xb7   : > { %288 = vmatpush.bf16.msra.mxu0 %v422_v17 }
  0xba   : > { %v421_v18 = vld [vmem:[#allocation3] sm:$0xff] }
  0xbb   : > { %289 = vmatpush.bf16.msra.mxu0 %v421_v18 }
  0xbe   : > { %416 = vmatmul.msk.bf16.vlgmr.msra.gmra.mxu0 %vm278_vm6, %v253_v19 }
 0x13b   : > { %v291_v21 = vpop.f32.mrf.mxu0 }
 0x13c   : > { %v301_v22 = vmul.f32 %v299_v20, %v291_v21 }
 0x13e   : > { %v308_v24 = vadd.f32 %v306_v23, %v301_v22 }
 0x140   : > { %v309_v25 = vmax.f32 %v308_v24, 0.0 }
 0x142   : > { %v310_v26 = vpack.c.bf16 %v309_v25, %v309_v25 }
 0x143   : > { %v293_v27 = vpop.f32.mrf.mxu0 }
 0x144   : > { %311 = vst [vmem:[%s202_s6] sm:$0xf] %v310_v26 }
 0x145   : > { %511 = shalt.err (!%p508_p5)
}
 0x146   : > { %424 = dma.vmem_to_hbm [thread:$0]  (%p632_p4), %s327_s7, 64, %s329_s8, %s313_s9  }
 0x147 PF: > { %p430_p6 = scmp.ge.s32.totalorder %s562_s20, 2  ;;  %s340_s22 = sand.u32 1, %s542_s15  }
 0x148   : > { %s341_s24 = scalar_lea.sflag [#allocation5], %s340_s22 }
 0x149   : > { %p427_p7 = pnand %p430_p6, %p639_p8 }
 0x14b   : > { %p428_p9 = pneg %p427_p7 }
 0x14d   : > { %537 = dma.done.wait (%p428_p9), %s341_s24, 64  }
 0x14e   : > { %539 = vsyncadd (%p428_p9), %s341_s24, 4294967232  ;;  %s17_s20 = sadd.s32 1, %s562_s20   ;;  %s705_s15 = smov %s546_s16 }
 0x14f   : > { %p14_p10 = scmp.ge.s32.totalorder %s17_s20, 4   ;;  %s706_s16 = smov %s550_s17 }
 0x150   : > { %s707_s17 = smov %s645_s28  ;;  %s708_s18 = smov %s558_s19 }
 0x151   : > { %s709_s19 = smov %s711_s23  ;;  %16 = sbr.rel (!%p14_p10) target bundleno = 4 (0x4), region = 75 }
 0x156   :  { %347 = vsyncpa [#allocation5], 1 }
 0x157   :  { %349 = vsyncpa [#allocation5 + $0x1], 1 }

</bundles_post_ra>
